<compile_context>
chip_gen: v5e
topology: v5e:2x2
jax: 0.10.0
libtpu: 0.0.40
codegen_flags: <defaults>
</compile_context>

<pallas_src>
import jax
import jax.numpy as jnp
from jax.experimental import pallas as pl
from jax.experimental.pallas import tpu as pltpu

_EPS = 1e-7
_LANES = 128


def _max_tile_rows():
    """Per-generation cap on rows of 128 boxes per grid step.

    Double-buffered VMEM per row = 2 inputs * 4 planes * 128 lanes * 4 B * 2
    buffers + output 128 * 4 B * 2 buffers = 9 KiB, so:
      1024 rows -> ~9 MiB  (fits v5e's 16 MiB scoped-VMEM default)
      2048 rows -> ~18 MiB (fits the 32 MiB scoped default on v6e / v7x)
    """
    try:
        kind = jax.devices()[0].device_kind.lower()
    except Exception:
        return 1024
    if any(tag in kind for tag in ("v6", "v7", "7x")):
        return 2048
    return 1024  # v5e and older: stay inside the 16 MiB scoped default


def _tiling(n):
    """Rows of 128 boxes, block row count (mult of 8, <= cap), grid, padded rows."""
    rows = -(-n // _LANES)
    rows8 = ((rows + 7) // 8) * 8
    cap = _max_tile_rows()
    if rows8 > 8:
        # Aim for grid >= 2: lets dimension_semantics=("parallel",) shard the
        # work across both TensorCores on v7x.  On single-TC chips this adds
        # only one ~0.35 us pipeline step.
        half = ((-(-rows8 // 2)) + 7) // 8 * 8
        tile_r = min(cap, half)
    else:
        tile_r = rows8
    grid = -(-rows8 // tile_r)
    rows_pad = grid * tile_r
    return tile_r, grid, rows_pad


def _diou_loss_kernel(pred_ref, tgt_ref, out_ref):
    # pred_ref / tgt_ref: (4, TILE_R, 128) f32 planes; out_ref: (TILE_R, 128).
    px1 = pred_ref[0]
    py1 = pred_ref[1]
    px2 = pred_ref[2]
    py2 = pred_ref[3]
    tx1 = tgt_ref[0]
    ty1 = tgt_ref[1]
    tx2 = tgt_ref[2]
    ty2 = tgt_ref[3]

    # Intersection.
    iw = jnp.maximum(jnp.minimum(px2, tx2) - jnp.maximum(px1, tx1), 0.0)
    ih = jnp.maximum(jnp.minimum(py2, ty2) - jnp.maximum(py1, ty1), 0.0)
    inter = iw * ih

    # IoU (exact divide — kernel is HBM-bound, compute slots have slack).
    union = (px2 - px1) * (py2 - py1) + (tx2 - tx1) * (ty2 - ty1) - inter
    iou = inter / (union + _EPS)

    # Smallest enclosing box diagonal (squared).
    cw = jnp.maximum(px2, tx2) - jnp.minimum(px1, tx1)
    ch = jnp.maximum(py2, ty2) - jnp.minimum(py1, ty1)
    diag_sq = cw * cw + ch * ch + _EPS

    # Squared center distance: ((p1+p2)/2 - (t1+t2)/2)^2 == 0.25*((p1+p2)-(t1+t2))^2
    dx = (px1 + px2) - (tx1 + tx2)
    dy = (py1 + py2) - (ty1 + ty2)
    center_sq = 0.25 * (dx * dx + dy * dy)

    out_ref[...] = 1.0 - iou + center_sq / diag_sq


def _diou_from_planes(pred_planes, tgt_planes, tile_r, grid, rows_pad):
    """pred_planes / tgt_planes: (4, rows_pad, 128) f32.  Returns (rows_pad, 128)."""
    in_spec = pl.BlockSpec((4, tile_r, _LANES), lambda i: (0, i, 0))
    return pl.pallas_call(
        _diou_loss_kernel,
        out_shape=jax.ShapeDtypeStruct((rows_pad, _LANES), jnp.float32),
        grid_spec=pltpu.PrefetchScalarGridSpec(
            num_scalar_prefetch=0,
            grid=(grid,),
            in_specs=[in_spec, in_spec],
            out_specs=pl.BlockSpec((tile_r, _LANES), lambda i: (i, 0)),
        ),
        compiler_params=pltpu.CompilerParams(
            dimension_semantics=("parallel",)),
    )(pred_planes, tgt_planes)


@jax.jit
def diou_loss(pred_xyxy, target_xyxy):
    """pred_xyxy, target_xyxy: (N, 4) xyxy boxes.  Returns (N,) DIoU loss."""
    n = pred_xyxy.shape[0]
    tile_r, grid, rows_pad = _tiling(n)
    n_pad = rows_pad * _LANES

    # Layout transform runs under the same jit; pred and target stay separate
    # inputs (no concatenate materialization).  For hot paths, keep boxes
    # coordinate-major upstream and feed (4, R, 128) planes to
    # _diou_from_planes directly to also skip this transpose.
    def planes(b):
        b = jnp.pad(b.astype(jnp.float32), ((0, n_pad - n), (0, 0)))
        return b.T.reshape(4, rows_pad, _LANES)

    out = _diou_from_planes(planes(pred_xyxy), planes(target_xyxy),
                            tile_r, grid, rows_pad)
    # (rows_pad, 128) -> (n_pad,) is a row-major bitcast; slice trims padding.
    return out.reshape(n_pad)[:n]


def _diou_loss_ref(pred, target):
    """Pure-JAX reference for correctness checking."""
    px1, py1, px2, py2 = [pred[:, i] for i in range(4)]
    tx1, ty1, tx2, ty2 = [target[:, i] for i in range(4)]
    iw = jnp.maximum(jnp.minimum(px2, tx2) - jnp.maximum(px1, tx1), 0.0)
    ih = jnp.maximum(jnp.minimum(py2, ty2) - jnp.maximum(py1, ty1), 0.0)
    inter = iw * ih
    union = (px2 - px1) * (py2 - py1) + (tx2 - tx1) * (ty2 - ty1) - inter
    iou = inter / (union + _EPS)
    diag = (jnp.maximum(px2, tx2) - jnp.minimum(px1, tx1)) ** 2 + \
           (jnp.maximum(py2, ty2) - jnp.minimum(py1, ty1)) ** 2 + _EPS
    cdist = ((px1 + px2) / 2 - (tx1 + tx2) / 2) ** 2 + \
            ((py1 + py2) / 2 - (ty1 + ty2) / 2) ** 2
    return 1.0 - (iou - cdist / diag)


def _make_boxes(key, n):
    k1, k2 = jax.random.split(key)
    xy = jax.random.uniform(k1, (n, 2), minval=0.0, maxval=100.0)
    wh = jax.random.uniform(k2, (n, 2), minval=1.0, maxval=50.0)
    return jnp.concatenate([xy, xy + wh], axis=1).astype(jnp.float32)  # (N,4) xyxy


if __name__ == "__main__":
    key = jax.random.PRNGKey(0)
    kp, kt = jax.random.split(key)
    n_boxes = 200  # intentionally not a multiple of the 128-lane tile
    pred = _make_boxes(kp, n_boxes)
    target = _make_boxes(kt, n_boxes)

    loss = jax.block_until_ready(diou_loss(pred, target))
    ref = _diou_loss_ref(pred, target)

    assert loss.shape == (n_boxes,)
    assert bool(jnp.all(jnp.isfinite(loss))), "non-finite loss values"
    # Exact f32 divides in-kernel -> tight tolerance vs the pure-JAX reference.
    assert jnp.allclose(loss, ref, atol=1e-4, rtol=1e-4), "mismatch vs reference"
    print("KERNEL_OK")
</pallas_src>

<mosaic_0001>
module attributes {stable_mosaic.version = 11 : i64} {
  func.func @_diou_loss_kernel(%arg0: i32, %arg1: memref<4x8x128xf32, #tpu.memory_space<vmem>>, %arg2: memref<4x8x128xf32, #tpu.memory_space<vmem>>, %arg3: memref<8x128xf32, #tpu.memory_space<vmem>>) attributes {dimension_semantics = [#tpu.dimension_semantics<parallel>], iteration_bounds = array<i64: 1>, scalar_prefetch = 0 : i64, scratch_operands = 0 : i64, tpu.core_type = #tpu.core_type<tc>, window_params = [{transform_indices = @transform_0, window_bounds = array<i64: 4, 8, 128>}, {transform_indices = @transform_1, window_bounds = array<i64: 4, 8, 128>}, {transform_indices = @transform_2, window_bounds = array<i64: 8, 128>}]} {
    %c0 = arith.constant 0 : index
    %c0_0 = arith.constant 0 : index
    %c0_1 = arith.constant 0 : index
    %0 = vector.load %arg1[%c0, %c0_0, %c0_1] : memref<4x8x128xf32, #tpu.memory_space<vmem>>, vector<1x8x128xf32>
    %1 = vector.shape_cast %0 : vector<1x8x128xf32> to vector<8x128xf32>
    %c1 = arith.constant 1 : index
    %c0_2 = arith.constant 0 : index
    %c0_3 = arith.constant 0 : index
    %2 = vector.load %arg1[%c1, %c0_2, %c0_3] : memref<4x8x128xf32, #tpu.memory_space<vmem>>, vector<1x8x128xf32>
    %3 = vector.shape_cast %2 : vector<1x8x128xf32> to vector<8x128xf32>
    %c2 = arith.constant 2 : index
    %c0_4 = arith.constant 0 : index
    %c0_5 = arith.constant 0 : index
    %4 = vector.load %arg1[%c2, %c0_4, %c0_5] : memref<4x8x128xf32, #tpu.memory_space<vmem>>, vector<1x8x128xf32>
    %5 = vector.shape_cast %4 : vector<1x8x128xf32> to vector<8x128xf32>
    %c3 = arith.constant 3 : index
    %c0_6 = arith.constant 0 : index
    %c0_7 = arith.constant 0 : index
    %6 = vector.load %arg1[%c3, %c0_6, %c0_7] : memref<4x8x128xf32, #tpu.memory_space<vmem>>, vector<1x8x128xf32>
    %7 = vector.shape_cast %6 : vector<1x8x128xf32> to vector<8x128xf32>
    %c0_8 = arith.constant 0 : index
    %c0_9 = arith.constant 0 : index
    %c0_10 = arith.constant 0 : index
    %8 = vector.load %arg2[%c0_8, %c0_9, %c0_10] : memref<4x8x128xf32, #tpu.memory_space<vmem>>, vector<1x8x128xf32>
    %9 = vector.shape_cast %8 : vector<1x8x128xf32> to vector<8x128xf32>
    %c1_11 = arith.constant 1 : index
    %c0_12 = arith.constant 0 : index
    %c0_13 = arith.constant 0 : index
    %10 = vector.load %arg2[%c1_11, %c0_12, %c0_13] : memref<4x8x128xf32, #tpu.memory_space<vmem>>, vector<1x8x128xf32>
    %11 = vector.shape_cast %10 : vector<1x8x128xf32> to vector<8x128xf32>
    %c2_14 = arith.constant 2 : index
    %c0_15 = arith.constant 0 : index
    %c0_16 = arith.constant 0 : index
    %12 = vector.load %arg2[%c2_14, %c0_15, %c0_16] : memref<4x8x128xf32, #tpu.memory_space<vmem>>, vector<1x8x128xf32>
    %13 = vector.shape_cast %12 : vector<1x8x128xf32> to vector<8x128xf32>
    %c3_17 = arith.constant 3 : index
    %c0_18 = arith.constant 0 : index
    %c0_19 = arith.constant 0 : index
    %14 = vector.load %arg2[%c3_17, %c0_18, %c0_19] : memref<4x8x128xf32, #tpu.memory_space<vmem>>, vector<1x8x128xf32>
    %15 = vector.shape_cast %14 : vector<1x8x128xf32> to vector<8x128xf32>
    %16 = arith.minimumf %5, %13 : vector<8x128xf32>
    %17 = arith.maximumf %1, %9 : vector<8x128xf32>
    %18 = arith.subf %16, %17 : vector<8x128xf32>
    %cst = arith.constant 0.000000e+00 : f32
    %19 = vector.broadcast %cst : f32 to vector<8x128xf32>
    %20 = arith.maximumf %18, %19 : vector<8x128xf32>
    %21 = arith.minimumf %7, %15 : vector<8x128xf32>
    %22 = arith.maximumf %3, %11 : vector<8x128xf32>
    %23 = arith.subf %21, %22 : vector<8x128xf32>
    %cst_20 = arith.constant 0.000000e+00 : f32
    %24 = vector.broadcast %cst_20 : f32 to vector<8x128xf32>
    %25 = arith.maximumf %23, %24 : vector<8x128xf32>
    %26 = arith.mulf %20, %25 : vector<8x128xf32>
    %27 = arith.subf %5, %1 : vector<8x128xf32>
    %28 = arith.subf %7, %3 : vector<8x128xf32>
    %29 = arith.mulf %27, %28 : vector<8x128xf32>
    %30 = arith.subf %13, %9 : vector<8x128xf32>
    %31 = arith.subf %15, %11 : vector<8x128xf32>
    %32 = arith.mulf %30, %31 : vector<8x128xf32>
    %33 = arith.addf %29, %32 : vector<8x128xf32>
    %34 = arith.subf %33, %26 : vector<8x128xf32>
    %cst_21 = arith.constant 1.000000e-07 : f32
    %35 = vector.broadcast %cst_21 : f32 to vector<8x128xf32>
    %36 = arith.addf %34, %35 : vector<8x128xf32>
    %37 = arith.divf %26, %36 : vector<8x128xf32>
    %38 = arith.maximumf %5, %13 : vector<8x128xf32>
    %39 = arith.minimumf %1, %9 : vector<8x128xf32>
    %40 = arith.subf %38, %39 : vector<8x128xf32>
    %41 = arith.maximumf %7, %15 : vector<8x128xf32>
    %42 = arith.minimumf %3, %11 : vector<8x128xf32>
    %43 = arith.subf %41, %42 : vector<8x128xf32>
    %44 = arith.mulf %40, %40 : vector<8x128xf32>
    %45 = arith.mulf %43, %43 : vector<8x128xf32>
    %46 = arith.addf %44, %45 : vector<8x128xf32>
    %cst_22 = arith.constant 1.000000e-07 : f32
    %47 = vector.broadcast %cst_22 : f32 to vector<8x128xf32>
    %48 = arith.addf %46, %47 : vector<8x128xf32>
    %49 = arith.addf %1, %5 : vector<8x128xf32>
    %50 = arith.addf %9, %13 : vector<8x128xf32>
    %51 = arith.subf %49, %50 : vector<8x128xf32>
    %52 = arith.addf %3, %7 : vector<8x128xf32>
    %53 = arith.addf %11, %15 : vector<8x128xf32>
    %54 = arith.subf %52, %53 : vector<8x128xf32>
    %55 = arith.mulf %51, %51 : vector<8x128xf32>
    %56 = arith.mulf %54, %54 : vector<8x128xf32>
    %57 = arith.addf %55, %56 : vector<8x128xf32>
    %cst_23 = arith.constant 2.500000e-01 : f32
    %58 = vector.broadcast %cst_23 : f32 to vector<8x128xf32>
    %59 = arith.mulf %58, %57 : vector<8x128xf32>
    %cst_24 = arith.constant 1.000000e+00 : f32
    %60 = vector.broadcast %cst_24 : f32 to vector<8x128xf32>
    %61 = arith.subf %60, %37 : vector<8x128xf32>
    %62 = arith.divf %59, %48 : vector<8x128xf32>
    %63 = arith.addf %61, %62 : vector<8x128xf32>
    %c0_25 = arith.constant 0 : index
    %c0_26 = arith.constant 0 : index
    %64 = vector.load %arg3[%c0_25, %c0_26] : memref<8x128xf32, #tpu.memory_space<vmem>>, vector<8x128xf32>
    tpu.vector_store %arg3[%c0_25, %c0_26], %63 {strides = array<i32>} : memref<8x128xf32, #tpu.memory_space<vmem>>, vector<8x128xf32>,
    return
  }
  func.func @transform_0(%arg0: i32) -> (i32, i32, i32) {
    %c0_i32 = arith.constant 0 : i32
    %c0_i32_0 = arith.constant 0 : i32
    %c0_i32_1 = arith.constant 0 : i32
    return %c0_i32, %arg0, %c0_i32_0 : i32, i32, i32
  }
  func.func @transform_1(%arg0: i32) -> (i32, i32, i32) {
    %c0_i32 = arith.constant 0 : i32
    %c0_i32_0 = arith.constant 0 : i32
    %c0_i32_1 = arith.constant 0 : i32
    return %c0_i32, %arg0, %c0_i32_0 : i32, i32, i32
  }
  func.func @transform_2(%arg0: i32) -> (i32, i32) {
    %c0_i32 = arith.constant 0 : i32
    %c0_i32_0 = arith.constant 0 : i32
    return %arg0, %c0_i32 : i32, i32
  }
}

</mosaic_0001>

<bundles_post_ra>
// kernel: diou_loss.1
= control target key start
LH: loop header
LB: loop body
LE: loop exit
PB: predicated region body
PF: predicated region fallthrough
CT: control target
= control target key end

     0   :  { %s152_s0 = inlined_call_operand.vmem [shape: f32[4,8,128], index: 0, kind: input, shape index: {}]   ;;  %s153_s1 = inlined_call_operand.vmem [shape: f32[4,8,128], index: 1, kind: input, shape index: {}]   ;;  %s154_s2 = inlined_call_operand.vmem [shape: f32[8,128], index: 2, kind: output, shape index: {}]  }
   0x1   :  { %v11_v0 = vld [vmem:[%s152_s0] sm:$0xff]  ;;  %v100_v1 = vld [vmem:[%s152_s0 + $0x8] sm:$0xff]  ;;  %v101_v2 = vld [vmem:[%s152_s0 + $0x10] sm:$0xff] }
   0x2   :  { %v102_v3 = vld [vmem:[%s152_s0 + $0x18] sm:$0xff]  ;;  %v18_v4 = vld [vmem:[%s153_s1] sm:$0xff]  ;;  %v103_v5 = vld [vmem:[%s153_s1 + $0x8] sm:$0xff]  ;;  %v34_v6 = vsub.f32 %v101_v2, %v11_v0  ;;  %v68_v32 = vadd.f32 %v101_v2, %v11_v0 }
   0x3   :  { %v104_v7 = vld [vmem:[%s153_s1 + $0x10] sm:$0xff]  ;;  %v105_v8 = vld [vmem:[%s153_s1 + $0x18] sm:$0xff]  ;;  %v26_v9 = vmax.f32 %v11_v0, %v18_v4  ;;  %v30_v10 = vmax.f32 %v100_v1, %v103_v5  ;;  %v35_v11 = vsub.f32 %v102_v3, %v100_v1  ;;  %v59_v12 = vmin.f32 %v11_v0, %v18_v4 }
   0x4   :  { %v25_v13 = vmin.f32 %v101_v2, %v104_v7  ;;  %v29_v14 = vmin.f32 %v102_v3, %v105_v8  ;;  %v37_v15 = vsub.f32 %v104_v7, %v18_v4  ;;  %v38_v16 = vsub.f32 %v105_v8, %v103_v5 }
   0x5   :  { %v36_v17 = vmul.f32 %v35_v11, %v34_v6  ;;  %v58_v18 = vmax.f32 %v101_v2, %v104_v7  ;;  %v61_v19 = vmax.f32 %v102_v3, %v105_v8  ;;  %v62_v20 = vmin.f32 %v100_v1, %v103_v5 }
   0x6   :  { %v27_v21 = vsub.f32 %v25_v13, %v26_v9  ;;  %v31_v22 = vsub.f32 %v29_v14, %v30_v10  ;;  %v39_v23 = vmul.f32 %v38_v16, %v37_v15  ;;  %v69_v34 = vadd.f32 %v104_v7, %v18_v4 }
   0x7   :  { %v60_v24 = vsub.f32 %v58_v18, %v59_v12  ;;  %v63_v25 = vsub.f32 %v61_v19, %v62_v20  ;;  %v71_v35 = vadd.f32 %v102_v3, %v100_v1  ;;  %v72_v36 = vadd.f32 %v105_v8, %v103_v5 }
   0x8   :  { %v28_v26 = vmax.f32 %v27_v21, 0.0  ;;  %v32_v27 = vmax.f32 %v31_v22, 0.0  ;;  %v40_v28 = vadd.f32 %v39_v23, %v36_v17  ;;  %v70_v40 = vsub.f32 %v68_v32, %v69_v34 }
   0x9   :  { %v64_v29 = vmul.f32 %v60_v24, %v60_v24  ;;  %v65_v30 = vmul.f32 %v63_v25, %v63_v25  ;;  %v73_v41 = vsub.f32 %v71_v35, %v72_v36 }
   0xa   :  { %v33_v31 = vmul.f32 %v32_v27, %v28_v26  ;;  %v74_v42 = vmul.f32 %v70_v40, %v70_v40 }
   0xb   :  { %v66_v33 = vadd.f32 %v65_v30, %v64_v29  ;;  %v75_v43 = vmul.f32 %v73_v41, %v73_v41 }
   0xc   :  { %v41_v37 = vsub.f32 %v40_v28, %v33_v31 }
   0xd   :  { %v67_v38 = vadd.f32 1e-07, %v66_v33  ;;  %v76_v48 = vadd.f32 %v75_v43, %v74_v42 }
   0xe   :  { %v42_v39 = vadd.f32 1e-07, %v41_v37 }
   0xf   :  { %106 = vrcp.f32 %v67_v38  ;;  %vm84_vm0 = vweird.f32 %v67_v38  ;;  %v90_v49 = vand.u32 2147483648, %v67_v38  ;;  %v88_v52 = vand.u32 2147483647, %v67_v38 }
  0x10   :  { %108 = vrcp.f32 %v42_v39  ;;  %v54_v50 = vand.u32 2147483648, %v42_v39  ;;  %vm48_vm2 = vweird.f32 %v42_v39  ;;  %v52_v54 = vand.u32 2147483647, %v42_v39 }
  0x11   :  { %v91_v57 = vor.u32 1.1754944e-38, %v90_v49  ;;  %vm89_vm6 = vcmp.eq.f32.partialorder %v88_v52, 8.507059e+37  ;;  %v77_v61 = vmul.f32 0.25, %v76_v48 }
  0x12   :  { %v55_v58 = vor.u32 1.1754944e-38, %v54_v50  ;;  %vm53_vm7 = vcmp.eq.f32.partialorder %v52_v54, 8.507059e+37 }
  0x15   :  { %v107_v44 = vpop.eup %106 }
  0x16   :  { %v109_v45 = vpop.eup %108  ;;  %v80_v46 = vmul.f32 %v107_v44, %v67_v38  ;;  %vm85_vm1 = vweird.f32 %v107_v44 }
  0x17   :  { %v44_v47 = vmul.f32 %v109_v45, %v42_v39  ;;  %vm49_vm3 = vweird.f32 %v109_v45  ;;  %vm86_vm4 = vmor %vm84_vm0, %vm85_vm1 }
  0x18   :  { %v81_v51 = vsub.f32 1.0, %v80_v46  ;;  %vm50_vm5 = vmor %vm48_vm2, %vm49_vm3 }
  0x19   :  { %v45_v53 = vsub.f32 1.0, %v44_v47 }
  0x1a   :  { %v82_v55 = vmul.f32 %v107_v44, %v81_v51 }
  0x1b   :  { %v46_v56 = vmul.f32 %v109_v45, %v45_v53 }
  0x1c   :  { %v83_v59 = vadd.f32 %v107_v44, %v82_v55 }
  0x1d   :  { %v47_v60 = vadd.f32 %v109_v45, %v46_v56 }
  0x1e   :  { %v87_v62 = vsel %vm86_vm4, %v107_v44, %v83_v59 }
  0x1f   :  { %v51_v63 = vsel %vm50_vm5, %v109_v45, %v47_v60  ;;  %v92_v0 = vsel %vm89_vm6, %v91_v57, %v87_v62 }
  0x20   :  { %v56_v1 = vsel %vm53_vm7, %v55_v58, %v51_v63  ;;  %v93_v3 = vmul.f32 %v92_v0, %v77_v61 }
  0x21   :  { %v57_v2 = vmul.f32 %v56_v1, %v33_v31 }
  0x23   :  { %v78_v4 = vsub.f32 1.0, %v57_v2 }
  0x25   :  { %v94_v5 = vadd.f32 %v93_v3, %v78_v4 }
  0x27   :  { %95 = vst [vmem:[%s154_s2] sm:$0xff] %v94_v5 }

</bundles_post_ra>
